<compile_context>
chip_gen: v5e
topology: v5e:2x2
jax: 0.10.0
libtpu: 0.0.40
codegen_flags: <defaults>
</compile_context>

<pallas_src>
import jax
import jax.numpy as jnp
import numpy as np
from jax.experimental import pallas as pl
from jax.experimental.pallas import tpu as pltpu

EPS = 1e-5


def _round_up(x, m):
    return (x + m - 1) // m * m


def _pick_group(c_pack):
    """Pick G = number of adjacent w-positions folded into the lane dim so that
    G*4*C_out is a (near-)multiple of 128: lane-dense stores, minimal padding waste."""
    best = None
    for g in (1, 2, 4, 8, 16, 32):
        lanes = _round_up(g * c_pack, 128)
        frac = (lanes - g * c_pack) / lanes
        if best is None or frac < best[2] - 1e-9:
            best = (g, lanes, frac)
        if frac == 0.0:
            break
    return best[0], best[1]


def _vmem_limit_bytes(streaming, constant, scratch):
    """Scoped-VMEM budget: streaming blocks double-buffered, grid-constant blocks once,
    plus in-kernel f32 temporaries.  Capped at 3/4 of this generation's physical VMEM."""
    try:
        info = pltpu.get_tpu_info()
        phys = int(getattr(info, "vmem_capacity_bytes", 64 << 20))
    except Exception:
        phys = 64 << 20                      # conservative fallback: v7x per-core VMEM
    cap = (phys * 3) // 4
    need = 2 * int(streaming) + int(constant) + int(scratch) + (2 << 20)
    return int(min(cap, max(need, 16 << 20)))


# ---------------- pass 1: deconv matmul (in registers) + per-tile BN partial sums ----------------
def _stats_kernel(x_ref, w_ref, s1_ref, s2_ref):
    # x_ref: (TM, K) bf16 ; w_ref: (K, L) bf16 ; s1/s2: (1, 1, L) f32 per-tile partials.
    y = jnp.dot(x_ref[...], w_ref[...], preferred_element_type=jnp.float32)
    s1_ref[0] = jnp.sum(y, axis=0, keepdims=True)
    s2_ref[0] = jnp.sum(y * y, axis=0, keepdims=True)


# ---------------- pass 2: recompute matmul + per-column affine (BN) + ReLU ----------------
def _apply_kernel(x_ref, w_ref, scale_ref, shift_ref, o_ref):
    # Recompute the cheap matmul (MXU is <5% utilized) instead of reading a stored conv
    # intermediate back from HBM; fused BN affine + ReLU; lane-dense f32 store.
    y = jnp.dot(x_ref[...], w_ref[...], preferred_element_type=jnp.float32)
    o_ref[...] = jnp.maximum(y * scale_ref[...] + shift_ref[...], 0.0)


def transpose_conv_block(x_nchw, weight, gamma, beta, *, tile_m=1024,
                         matmul_dtype=jnp.bfloat16):
    """x_nchw: (N, C_in, H, W); weight: (C_in, C_out, 2, 2); gamma/beta: (C_out,).
    Returns (N, C_out, 2H, 2W) f32 = ConvTranspose2d(k=2,s=2,bias=False) + BN(train) + ReLU."""
    n, c_in, h, w_sp = x_nchw.shape
    c_in_w, c_out, kh, kw = weight.shape
    assert c_in_w == c_in and (kh, kw) == (2, 2)

    # k=2/s=2/p=0 deconv has zero output overlap -> one (M, K) @ (K, L) matmul where
    # a row is (n, h, w-block of G pixels) and a column is (kh, g, kw, co).
    c_pack = 4 * c_out
    grp, lanes = _pick_group(c_pack)
    w_pad_sp = _round_up(w_sp, grp)
    wg = w_pad_sp // grp
    m_rows = n * h * wg
    k_real = grp * c_in
    k_dim = _round_up(k_real, 8)

    # Tile rows: as large as useful for the HBM roofline, but always >=2 grid steps so
    # both v7x TensorCores get work ("parallel" grid axis).
    tm = min(tile_m, _round_up(max(pl.cdiv(m_rows, 2), 1), 8))
    tm = _round_up(max(tm, 8), 8)
    m_pad = _round_up(m_rows, tm)
    num_tiles = m_pad // tm

    # ---- input layout: NCHW -> (M_pad, K), feature order (g, ci).
    # (Single wrapper transpose; an NHWC-native model would avoid it entirely.)
    x_nhwc = jnp.transpose(x_nchw, (0, 2, 3, 1)).astype(jnp.float32)
    x_nhwc = jnp.pad(x_nhwc, ((0, 0), (0, 0), (0, w_pad_sp - w_sp), (0, 0)))
    x_flat = x_nhwc.reshape(m_rows, k_real)
    x_flat = jnp.pad(x_flat, ((0, m_pad - m_rows), (0, k_dim - k_real))).astype(matmul_dtype)

    # ---- weight: (C_in, C_out, 2, 2) -> block-diagonal (K, L); row (g, ci), col (kh, g, kw, co).
    w_perm = jnp.transpose(weight.astype(jnp.float32), (2, 0, 3, 1))      # (kh, ci, kw, co)
    eye = jnp.eye(grp, dtype=jnp.float32)
    w_big = jnp.einsum('gf,hiwo->gihfwo', eye, w_perm)                    # (g, ci, kh, g, kw, co)
    w_big = w_big.reshape(k_real, grp * c_pack)
    w_big = jnp.pad(w_big, ((0, k_dim - k_real), (0, lanes - grp * c_pack))).astype(matmul_dtype)

    itemsize = jnp.dtype(matmul_dtype).itemsize
    x_tile_b = tm * max(k_dim, 128) * itemsize          # lane-padded VMEM footprint of x tile
    w_b = max(k_dim, 16) * lanes * itemsize             # grid-constant (counted once)
    y_tmp_b = 2 * tm * lanes * 4                        # in-register/VMEM f32 y and y*y temps
    stats_b = 2 * 8 * lanes * 4

    s1_t, s2_t = pl.pallas_call(
        _stats_kernel,
        out_shape=(jax.ShapeDtypeStruct((num_tiles, 1, lanes), jnp.float32),
                   jax.ShapeDtypeStruct((num_tiles, 1, lanes), jnp.float32)),
        grid=(num_tiles,),
        in_specs=[
            pl.BlockSpec((tm, k_dim), lambda i: (i, 0)),
            pl.BlockSpec((k_dim, lanes), lambda i: (0, 0)),
        ],
        out_specs=(
            pl.BlockSpec((1, 1, lanes), lambda i: (i, 0, 0)),
            pl.BlockSpec((1, 1, lanes), lambda i: (i, 0, 0)),
        ),
        compiler_params=pltpu.CompilerParams(
            dimension_semantics=("parallel",),
            vmem_limit_bytes=_vmem_limit_bytes(x_tile_b + stats_b, w_b, y_tmp_b)),
        cost_estimate=pl.CostEstimate(
            flops=2 * m_pad * k_dim * lanes, transcendentals=0,
            bytes_accessed=m_pad * k_dim * itemsize + k_dim * lanes * itemsize
                           + 2 * num_tiles * lanes * 4),
    )(x_flat, w_big)

    # ---- tiny O(C) glue: per-tile partials -> global BN batch stats -> per-column affine.
    s1 = jnp.sum(s1_t, axis=(0, 1))[:grp * c_pack].reshape(2, grp, 2, c_out).sum(axis=(0, 1, 2))
    s2 = jnp.sum(s2_t, axis=(0, 1))[:grp * c_pack].reshape(2, grp, 2, c_out).sum(axis=(0, 1, 2))
    n_elems = 4.0 * n * h * w_sp                        # true N * 2H * 2W per output channel
    mean = s1 / n_elems
    var = s2 / n_elems - mean * mean                    # biased variance (BN training mode)
    # TODO(synk): E[y^2]-E[y]^2 can lose precision for strongly off-centered activations at
    # very large N*H*W; a shifted/Welford pass-1 accumulation would be more robust.
    inv = jax.lax.rsqrt(var + EPS)
    scale_c = gamma.astype(jnp.float32).reshape(-1) * inv
    shift_c = beta.astype(jnp.float32).reshape(-1) - mean * scale_c
    scale_l = jnp.pad(jnp.broadcast_to(scale_c, (2, grp, 2, c_out)).reshape(-1),
                      (0, lanes - grp * c_pack)).reshape(1, lanes)
    shift_l = jnp.pad(jnp.broadcast_to(shift_c, (2, grp, 2, c_out)).reshape(-1),
                      (0, lanes - grp * c_pack)).reshape(1, lanes)

    out_tile_b = tm * lanes * 4
    out_flat = pl.pallas_call(
        _apply_kernel,
        out_shape=jax.ShapeDtypeStruct((m_pad, lanes), jnp.float32),
        grid=(num_tiles,),
        in_specs=[
            pl.BlockSpec((tm, k_dim), lambda i: (i, 0)),
            pl.BlockSpec((k_dim, lanes), lambda i: (0, 0)),
            pl.BlockSpec((1, lanes), lambda i: (0, 0)),
            pl.BlockSpec((1, lanes), lambda i: (0, 0)),
        ],
        out_specs=pl.BlockSpec((tm, lanes), lambda i: (i, 0)),
        compiler_params=pltpu.CompilerParams(
            dimension_semantics=("parallel",),
            vmem_limit_bytes=_vmem_limit_bytes(
                x_tile_b + out_tile_b, w_b + 2 * 8 * lanes * 4, tm * lanes * 4)),
        cost_estimate=pl.CostEstimate(
            flops=2 * m_pad * k_dim * lanes + 2 * m_pad * lanes, transcendentals=0,
            bytes_accessed=m_pad * k_dim * itemsize + k_dim * lanes * itemsize
                           + m_pad * lanes * 4),
    )(x_flat, w_big, scale_l, shift_l)

    # ---- un-interleave (M, L) -> NCHW with a single fused transpose.
    # An NHWC consumer would transpose (0,1,3,2,4,5,6) of the same 7-D view instead;
    # keeping the model NHWC end-to-end removes both wrapper transposes.
    out_r = out_flat[:m_rows, :grp * c_pack].reshape(n, h, wg, 2, grp, 2, c_out)  # (n,h,wb,kh,g,kw,co)
    out = jnp.transpose(out_r, (0, 6, 1, 3, 2, 4, 5))                             # (n,co,h,kh,wb,g,kw)
    out = out.reshape(n, c_out, 2 * h, 2 * w_pad_sp)[:, :, :, :2 * w_sp]
    return out


def _reference(x, weight, gamma, beta, matmul_dtype=jnp.bfloat16):
    """Pure-JAX reference matching PyTorch ConvTranspose2d(k=2,s=2,bias=False)+BN(train)+ReLU
    (matmul operands rounded to the same dtype the kernel feeds the MXU)."""
    n, c_in, h, w_sp = x.shape
    c_out = weight.shape[1]
    t = jnp.einsum('nihw,ioab->nohawb',
                   x.astype(matmul_dtype), weight.astype(matmul_dtype),
                   preferred_element_type=jnp.float32)
    conv = t.reshape(n, c_out, 2 * h, 2 * w_sp)
    mean = conv.mean(axis=(0, 2, 3), keepdims=True)
    var = ((conv - mean) ** 2).mean(axis=(0, 2, 3), keepdims=True)  # biased
    y = (conv - mean) * jax.lax.rsqrt(var + EPS)
    y = y * gamma.reshape(1, -1, 1, 1) + beta.reshape(1, -1, 1, 1)
    return jnp.maximum(y, 0.0)


if __name__ == "__main__":
    key = jax.random.PRNGKey(0)
    k_x, k_w = jax.random.split(key)

    N, C_IN, H, W = 2, 4, 16, 16
    C_OUT = 8

    x = jax.random.normal(k_x, (N, C_IN, H, W), dtype=jnp.float32)
    # ConvTranspose2d weight shape: (in_channels, out_channels, kH, kW)
    weight = jax.random.normal(k_w, (C_IN, C_OUT, 2, 2), dtype=jnp.float32) * 0.1
    # Deterministic, non-trivial BatchNorm affine params.
    gamma = 1.0 + 0.1 * jnp.arange(C_OUT, dtype=jnp.float32)
    beta = 0.05 * jnp.arange(C_OUT, dtype=jnp.float32) - 0.2

    out = transpose_conv_block(x, weight, gamma, beta)
    out = jax.block_until_ready(out)

    ref = _reference(x, weight, gamma, beta)
    np.testing.assert_allclose(np.asarray(out), np.asarray(ref), atol=1e-4, rtol=1e-3)
    assert out.shape == (N, C_OUT, 2 * H, 2 * W)

    print("KERNEL_OK")
</pallas_src>

<mosaic_0001>
module attributes {stable_mosaic.version = 11 : i64} {
  func.func @_stats_kernel(%arg0: i32, %arg1: memref<64x16xbf16, #tpu.memory_space<vmem>>, %arg2: memref<16x128xbf16, #tpu.memory_space<vmem>>, %arg3: memref<1x1x128xf32, #tpu.memory_space<vmem>>, %arg4: memref<1x1x128xf32, #tpu.memory_space<vmem>>) attributes {dimension_semantics = [#tpu.dimension_semantics<parallel>], iteration_bounds = array<i64: 2>, scalar_prefetch = 0 : i64, scratch_operands = 0 : i64, tpu.core_type = #tpu.core_type<tc>, window_params = [{transform_indices = @transform_0, window_bounds = array<i64: 64, 16>}, {pipeline_mode = #tpu.pipeline_mode<synchronous>, transform_indices = @transform_1, window_bounds = array<i64: 16, 128>}, {transform_indices = @transform_2, window_bounds = array<i64: 1, 1, 128>}, {transform_indices = @transform_3, window_bounds = array<i64: 1, 1, 128>}]} {
    %c0 = arith.constant 0 : index
    %c0_0 = arith.constant 0 : index
    %0 = vector.load %arg1[%c0, %c0_0] : memref<64x16xbf16, #tpu.memory_space<vmem>>, vector<64x16xbf16>
    %c0_1 = arith.constant 0 : index
    %c0_2 = arith.constant 0 : index
    %1 = vector.load %arg2[%c0_1, %c0_2] : memref<16x128xbf16, #tpu.memory_space<vmem>>, vector<16x128xbf16>
    %cst = arith.constant dense<0.000000e+00> : vector<64x128xf32>
    %2 = tpu.matmul %0, %1, %cst {dimension_numbers = #tpu.dot_dimension_numbers<[1], [0], [0], [1], [0, 0, 1, 1], [], []>} : vector<64x16xbf16>, vector<16x128xbf16>, vector<64x128xf32> -> vector<64x128xf32>
    %cst_3 = arith.constant dense<0.000000e+00> : vector<128xf32>
    %3 = vector.multi_reduction <add>, %2, %cst_3 [0] : vector<64x128xf32> to vector<128xf32>
    %4 = vector.shape_cast %3 : vector<128xf32> to vector<1x128xf32>
    %c0_4 = arith.constant 0 : index
    %c0_5 = arith.constant 0 : index
    %c0_6 = arith.constant 0 : index
    %5 = vector.load %arg3[%c0_4, %c0_5, %c0_6] : memref<1x1x128xf32, #tpu.memory_space<vmem>>, vector<1x1x128xf32>
    %6 = vector.shape_cast %5 : vector<1x1x128xf32> to vector<1x128xf32>
    %7 = vector.shape_cast %4 : vector<1x128xf32> to vector<1x1x128xf32>
    tpu.vector_store %arg3[%c0_4, %c0_5, %c0_6], %7 {strides = array<i32>} : memref<1x1x128xf32, #tpu.memory_space<vmem>>, vector<1x1x128xf32>,
    %8 = arith.mulf %2, %2 : vector<64x128xf32>
    %cst_7 = arith.constant dense<0.000000e+00> : vector<128xf32>
    %9 = vector.multi_reduction <add>, %8, %cst_7 [0] : vector<64x128xf32> to vector<128xf32>
    %10 = vector.shape_cast %9 : vector<128xf32> to vector<1x128xf32>
    %c0_8 = arith.constant 0 : index
    %c0_9 = arith.constant 0 : index
    %c0_10 = arith.constant 0 : index
    %11 = vector.load %arg4[%c0_8, %c0_9, %c0_10] : memref<1x1x128xf32, #tpu.memory_space<vmem>>, vector<1x1x128xf32>
    %12 = vector.shape_cast %11 : vector<1x1x128xf32> to vector<1x128xf32>
    %13 = vector.shape_cast %10 : vector<1x128xf32> to vector<1x1x128xf32>
    tpu.vector_store %arg4[%c0_8, %c0_9, %c0_10], %13 {strides = array<i32>} : memref<1x1x128xf32, #tpu.memory_space<vmem>>, vector<1x1x128xf32>,
    return
  }
  func.func @transform_0(%arg0: i32) -> (i32, i32) {
    %c0_i32 = arith.constant 0 : i32
    %c0_i32_0 = arith.constant 0 : i32
    return %arg0, %c0_i32 : i32, i32
  }
  func.func @transform_1(%arg0: i32) -> (i32, i32) {
    %c0_i32 = arith.constant 0 : i32
    %c0_i32_0 = arith.constant 0 : i32
    %c0_i32_1 = arith.constant 0 : i32
    return %c0_i32, %c0_i32_0 : i32, i32
  }
  func.func @transform_2(%arg0: i32) -> (i32, i32, i32) {
    %c0_i32 = arith.constant 0 : i32
    %c0_i32_0 = arith.constant 0 : i32
    %c0_i32_1 = arith.constant 0 : i32
    return %arg0, %c0_i32, %c0_i32_0 : i32, i32, i32
  }
  func.func @transform_3(%arg0: i32) -> (i32, i32, i32) {
    %c0_i32 = arith.constant 0 : i32
    %c0_i32_0 = arith.constant 0 : i32
    %c0_i32_1 = arith.constant 0 : i32
    return %arg0, %c0_i32, %c0_i32_0 : i32, i32, i32
  }
}

</mosaic_0001>

<bundles_post_ra>
// kernel: tpu_custom_call.1
= control target key start
LH: loop header
LB: loop body
LE: loop exit
PB: predicated region body
PF: predicated region fallthrough
CT: control target
= control target key end

     0   :  { %9 = vsyncpa [#allocation3], 0  ;;  %s733_s0 = inlined_call_operand.vmem [shape: bf16[128,16], index: 0, kind: input, shape index: {}]   ;;  %s734_s1 = inlined_call_operand.vmem [shape: bf16[16,128], index: 1, kind: input, shape index: {}]   ;;  %s735_s2 = inlined_call_operand.hbm [shape: f32[2,1,128], index: 2, kind: output, shape index: {0}]   ;;  %s736_s3 = inlined_call_operand.hbm [shape: f32[2,1,128], index: 3, kind: output, shape index: {1}]  }
   0x1   :  { %11 = vsyncpa [#allocation3 + $0x1], 0 }
   0x2   :  { %12 = vsyncpa [#allocation5], 0 }
   0x3   :  { %14 = vsyncpa [#allocation5 + $0x1], 0  ;;  %s608_s12 = smov 0   ;;  %s610_s13 = smov 0  }
   0x4   :  { %s612_s14 = smov 0   ;;  %s614_s15 = smov 0  }
   0x5 LB: > { %s629_s16 = sadd.s32 4294967295, %s586_s15   ;;  %s408_s17 = sadd.s32 4294967294, %s586_s15   ;;  %s586_s15 = sphi %s614_s15, %s742_s15   ;;  %s582_s14 = sphi %s612_s14, %s741_s14   ;;  %s578_s13 = sphi %s610_s13, %s740_s13   ;;  %s574_s12 = sphi %s608_s12, %s739_s12  }
   0x6   : > { %s633_s18 = sadd.s32 1, %s586_s15   ;;  %s74_s19 = sadd.s32 1, %s582_s14 }
   0x7   : > { %s71_s20 = ssub.s32 %s586_s15, %s633_s18  ;;  %p84_p0 = scmp.ne.s32.totalorder %s582_s14, %s578_s13 }
   0x8   : > { %p72_p1 = scmp.eq.s32.totalorder %s71_s20, 0  ;;  %p85_p2 = scmp.eq.s32.totalorder %s629_s16, 1 }
   0x9   : > { %p90_p3 = scmp.ne.s32.totalorder %s578_s13, %s574_s12  ;;  %p91_p4 = scmp.eq.s32.totalorder %s408_s17, 1 }
   0xa   : > { %s644_s21 = scalar_select %p72_p1, %s582_s14, %s74_s19  }
   0xb   : > { %p646_p5 = por %p85_p2, %p84_p0  ;;  %p650_p6 = por %p91_p4, %p90_p3 }
   0xc   : > { %p411_p7 = scmp.ge.s32.totalorder %s586_s15, 1  ;;  %p147_p8 = scmp.lt.s32.totalorder %s586_s15, 3 }
   0xe   : > { %p148_p9 = pnand %p411_p7, %p147_p8 }
   0xf   : > { %s412_s26 = sshll.u32 (!%p148_p9), %s629_s16, 3  ;;  %s664_s4 = sand.u32 (!%p148_p9), 1, %s578_s13  }
  0x10   : > { %151 = sbr.rel (%p148_p9) target bundleno = 200 (0xc8), region = 28  ;;  %p175_p10 = scmp.lt.s32.totalorder (!%p148_p9), %s412_s26, 15 }
  0x11   : > { %s308_s7 = scalar_lea.hbm (!%p148_p9), %s735_s2, %s629_s16  ;;  %s321_s10 = scalar_lea.hbm (!%p148_p9), %s736_s3, %s629_s16 }
  0x12   : > { %s167_s11 = scalar_lea.vmem (!%p148_p9), [#allocation2], %s664_s4  ;;  %s677_s19 = sshll.u32 (!%p148_p9), %s308_s7, 4  ;;  %s313_s19 = int_to_ptr.hbm [resolvable:$true] %s677_s19 }
  0x13   : > { %s675_s17 = sshll.u32 (!%p148_p9), %s167_s11, 4  ;;  %s173_s20 = scalar_lea.vmem (!%p148_p9), [#allocation4], %s664_s4  ;;  %s311_s17 = int_to_ptr.vmem [resolvable:$true] %s675_s17 }
  0x14   : > { %s680_s24 = sshll.u32 (!%p148_p9), %s173_s20, 4  ;;  %s682_s25 = sshll.u32 (!%p148_p9), %s321_s10, 4  ;;  %s324_s24 = int_to_ptr.vmem [resolvable:$true] %s680_s24  ;;  %s326_s25 = int_to_ptr.hbm [resolvable:$true] %s682_s25 }
  0x15   : > { %v444_v0 = vld [vmem:[%s734_s1] sm:$0xff]  ;;  %s744_s26 = smov (!%p175_p10, %s412_s26), 15  ;;  %vm217_vm0 = vcmask 130048   ;;  %s296_s16 = scalar_lea.sflag [#allocation3], %s664_s4 }
  0x16   : > { %237 = vmatpush.bf16.msra.mxu0 %v444_v0  ;;  %445 = vmatpush.bf16.msra.mxu1 %v444_v0  ;;  %s413_s27 = sshll.u32 %s744_s26, 2  ;;  %s506_s26 = sshra.s32 %s313_s19, 4  ;;  %s507_s26 = int_to_ptr.hbm [resolvable:$true] %s506_s26 }
  0x17   : > { %446 = vmatpush.bf16.msra.mxu2 %v444_v0  ;;  %447 = vmatpush.bf16.msra.mxu3 %v444_v0  ;;  %s178_s30 = scalar_lea.vmem %s733_s0, %s413_s27  ;;  %s508_s27 = scalar_lea.hbm %s507_s26, 1 }
  0x18   : > { %v440_v1 = vld [vmem:[%s178_s30] sm:$0xff]  ;;  %v441_v2 = vld [vmem:[%s178_s30 + $0x8] sm:$0xff]  ;;  %v442_v3 = vld [vmem:[%s178_s30 + $0x10] sm:$0xff]  ;;  %p509_p11 = scmp.ne.s32.totalorder %s507_s26, %s508_s27  ;;  %p513_p0 = scmp.lt.s32.totalorder %s507_s26, %s735_s2 }
  0x19   : > { %v443_v4 = vld [vmem:[%s178_s30 + $0x18] sm:$0xff]  ;;  %434 = vmatmul.msk.bf16.vlgmr.msra.gmra.mxu0 %vm217_vm0, %v440_v1  ;;  %435 = vmatmul.msk.bf16.vlgmr.msra.gmra.mxu1 %vm217_vm0, %v441_v2  ;;  %s512_s30 = scalar_lea.hbm %s735_s2, 2 }
  0x1a   : > { %436 = vmatmul.msk.bf16.vlgmr.msra.gmra.mxu2 %vm217_vm0, %v442_v3  ;;  %437 = vmatmul.msk.bf16.vlgmr.msra.gmra.mxu3 %vm217_vm0, %v443_v4  ;;  %p510_p12 = pnand %p509_p11, %p646_p5  ;;  %p514_p1 = scmp.lt.s32.totalorder %s512_s30, %s508_s27 }
  0x1c   : > { %p511_p13 = pneg %p510_p12  ;;  %p515_p2 = por %p514_p1, %p513_p0 }
  0x1e   : > { %p516_p3 = pnand %p515_p2, %p511_p13 }
  0x96   : > { %v239_v5 = vpop.f32.mrf.mxu0  ;;  %v244_v6 = vpop.f32.mrf.mxu1 }
  0x97   : > { %v273_v10 = vmul.f32 %v239_v5, %v239_v5  ;;  %v275_v14 = vmul.f32 %v244_v6, %v244_v6 }
  0x9d   : > { %v249_v7 = vpop.f32.mrf.mxu2  ;;  %v254_v8 = vpop.f32.mrf.mxu3 }
  0x9e   : > { %v241_v9 = vpop.f32.mrf.mxu0  ;;  %v246_v13 = vpop.f32.mrf.mxu1  ;;  %v277_v20 = vmul.f32 %v249_v7, %v249_v7  ;;  %v279_v28 = vmul.f32 %v254_v8, %v254_v8 }
  0x9f   : > { %v259_v11 = vadd.f32 %v241_v9, %v239_v5  ;;  %v274_v12 = vmul.f32 %v241_v9, %v241_v9  ;;  %v276_v18 = vmul.f32 %v246_v13, %v246_v13 }
  0xa1   : > { %v281_v15 = vadd.f32 %v274_v12, %v273_v10  ;;  %v260_v16 = vadd.f32 %v259_v11, %v244_v6 }
  0xa3   : > { %v261_v17 = vadd.f32 %v260_v16, %v246_v13  ;;  %v282_v19 = vadd.f32 %v281_v15, %v275_v14 }
  0xa5   : > { %v283_v21 = vadd.f32 %v282_v19, %v276_v18  ;;  %v251_v22 = vpop.f32.mrf.mxu2  ;;  %v262_v23 = vadd.f32 %v261_v17, %v249_v7  ;;  %v256_v27 = vpop.f32.mrf.mxu3 }
  0xa6   : > { %v278_v25 = vmul.f32 %v251_v22, %v251_v22  ;;  %v280_v32 = vmul.f32 %v256_v27, %v256_v27 }
  0xa7   : > { %v263_v24 = vadd.f32 %v262_v23, %v251_v22  ;;  %v284_v26 = vadd.f32 %v283_v21, %v277_v20 }
  0xa9   : > { %v285_v29 = vadd.f32 %v284_v26, %v278_v25  ;;  %v264_v30 = vadd.f32 %v263_v24, %v254_v8 }
  0xab   : > { %v265_v31 = vadd.f32 %v264_v30, %v256_v27  ;;  %v286_v33 = vadd.f32 %v285_v29, %v279_v28 }
  0xad   : > { %v266_v34 = vrot.slane %v265_v31, 4  ;;  %v287_v35 = vadd.f32 %v286_v33, %v280_v32 }
  0xaf   : > { %v267_v36 = vadd.f32 %v266_v34, %v265_v31  ;;  %v288_v37 = vrot.slane %v287_v35, 4 }
  0xb1   : > { %v268_v38 = vrot.slane %v267_v36, 2  ;;  %v289_v39 = vadd.f32 %v288_v37, %v287_v35 }
  0xb3   : > { %v269_v40 = vadd.f32 %v268_v38, %v267_v36  ;;  %v290_v41 = vrot.slane %v289_v39, 2 }
  0xb5   : > { %v270_v42 = vrot.slane %v269_v40, 1  ;;  %v291_v43 = vadd.f32 %v290_v41, %v289_v39 }
  0xb7   : > { %v271_v44 = vadd.f32 %v270_v42, %v269_v40  ;;  %v292_v45 = vrot.slane %v291_v43, 1 }
  0xb9   : > { %272 = vst [vmem:[%s167_s11] sm:$0x1] %v271_v44  ;;  %v293_v46 = vadd.f32 %v292_v45, %v291_v43 }
  0xba   : > { %519 = shalt.err (!%p516_p3)
}
  0xbb   : > { %448 = dma.vmem_to_hbm [thread:$0]  (%p646_p5), %s311_s17, 16, %s313_s19, %s296_s16   ;;  %294 = vst [vmem:[%s173_s20] sm:$0x1] %v293_v46 }
  0xbc   : > { %s300_s7 = scalar_lea.sflag [#allocation5], %s664_s4  ;;  %s534_s8 = sshra.s32 %s326_s25, 4  ;;  %s535_s8 = int_to_ptr.hbm [resolvable:$true] %s534_s8 }
  0xbd   : > { %s536_s9 = scalar_lea.hbm %s535_s8, 1  ;;  %s540_s26 = scalar_lea.hbm %s736_s3, 2 }
  0xbe   : > { %p537_p4 = scmp.ne.s32.totalorder %s535_s8, %s536_s9  ;;  %p541_p9 = scmp.lt.s32.totalorder %s535_s8, %s736_s3 }
  0xbf   : > { %p542_p10 = scmp.lt.s32.totalorder %s540_s26, %s536_s9 }
  0xc0   : > { %p538_p7 = pnand %p537_p4, %p646_p5 }
  0xc1   : > { %p543_p11 = por %p542_p10, %p541_p9 }
  0xc2   : > { %p539_p8 = pneg %p538_p7 }
  0xc4   : > { %p544_p12 = pnand %p543_p11, %p539_p8 }
  0xc6   : > { %547 = shalt.err (!%p544_p12)
}
  0xc7   : > { %449 = dma.vmem_to_hbm [thread:$0]  (%p646_p5), %s324_s24, 16, %s326_s25, %s300_s7  }
  0xc8 PF: > { %p459_p13 = scmp.ge.s32.totalorder %s586_s15, 2  ;;  %s337_s4 = sand.u32 1, %s574_s12  }
  0xc9   : > { %s338_s17 = scalar_lea.sflag [#allocation3], %s337_s4 }
  0xca   : > { %p453_p0 = pnand %p459_p13, %p650_p6 }
  0xcc   : > { %p454_p1 = pneg %p453_p0 }
  0xce   : > { %565 = dma.done.wait (%p454_p1), %s338_s17, 16  }
  0xcf   : > { %567 = vsyncadd (%p454_p1), %s338_s17, 4294967280  ;;  %s347_s19 = scalar_lea.sflag [#allocation5], %s337_s4 }
  0xd0   : > { %569 = dma.done.wait (%p454_p1), %s347_s19, 16  }
  0xd1   : > { %571 = vsyncadd (%p454_p1), %s347_s19, 4294967280  ;;  %p17_p5 = scmp.ge.s32.totalorder %s633_s18, 4   ;;  %s739_s12 = smov %s578_s13 }
  0xd2   : > { %s740_s13 = smov %s582_s14  ;;  %s741_s14 = smov %s644_s21 }
  0xd3   : > { %s742_s15 = smov %s633_s18  ;;  %19 = sbr.rel (!%p17_p5) target bundleno = 5 (0x5), region = 80 }
  0xd8   :  { %352 = vsyncpa [#allocation3], 1 }
  0xd9   :  { %354 = vsyncpa [#allocation3 + $0x1], 1 }
  0xda   :  { %355 = vsyncpa [#allocation5], 1 }
  0xdb   :  { %357 = vsyncpa [#allocation5 + $0x1], 1 }

</bundles_post_ra>
